<compile_context>
chip_gen: v7x
topology: tpu7x:2x2x1
jax: 0.10.0
libtpu: 0.0.40
codegen_flags: <defaults>
</compile_context>

<pallas_src>
import functools

import jax
import jax.numpy as jnp
from jax import lax
from jax.experimental import pallas as pl
from jax.experimental.pallas import tpu as pltpu


# --------------------------------------------------------------------------
# Kernel body
# --------------------------------------------------------------------------
def _monophonic_kernel(x_ref, o_ref, *, idx_dtype):
    # x_ref / o_ref: (g, P, t_block) tile in VMEM.  One-hot along axis 1.
    x = x_ref[...]
    P = x.shape[1]

    # Small (1, P, 1) index vector; int32 iota is always lowerable, then cast
    # down to the chosen index width (cheap: tiny array, outside any loop).
    iota_p = lax.broadcasted_iota(jnp.int32, (1, P, 1), 1).astype(idx_dtype)
    sentinel = jnp.asarray(P, dtype=idx_dtype)

    x_max = jnp.max(x, axis=1, keepdims=True)                    # (g, 1, t)
    # First-occurrence argmax (torch.max tie-breaking): smallest index among
    # positions equal to the max.  Index math stays at `idx_dtype` width.
    idx_or_big = jnp.where(x == x_max, iota_p, sentinel)         # (g, P, t)
    first_idx = jnp.min(idx_or_big, axis=1, keepdims=True)       # (g, 1, t)

    o_ref[...] = (iota_p == first_idx).astype(o_ref.dtype)


# --------------------------------------------------------------------------
# Tiling helpers
# --------------------------------------------------------------------------
def _roundup(a, m):
    return ((a + m - 1) // m) * m


def _cdiv(a, b):
    return (a + b - 1) // b


def _index_dtype(x_dtype, P):
    """Keep tie-break index math at input width when P (and the sentinel P)
    are exactly representable; otherwise use int32."""
    d = jnp.dtype(x_dtype)
    if d == jnp.float32 and P <= (1 << 24):
        return jnp.float32
    if d == jnp.bfloat16 and P <= 256:
        return jnp.bfloat16
    if d == jnp.float16 and P <= 2048:
        return jnp.float16
    return jnp.int32


def _vmem_limit_bytes():
    """Generation-aware scoped-VMEM limit: half of physical, capped at 64 MiB
    (=> 64 MiB on v5e/v6e's 128 MiB, 32 MiB on v7x's 64 MiB)."""
    cap = 64 << 20  # conservative fallback = v7x physical
    try:
        info = pltpu.get_tpu_info()
        c = getattr(info, "vmem_capacity_bytes", None)
        if c:
            cap = int(c)
    except Exception:
        pass
    return max(32 << 20, min(64 << 20, cap // 2))


def _choose_tiling(N, P, T, itemsize, target_bytes):
    """Pick (rows_per_block g, t_block, padded_tile_bytes).

    Sizes use the padded VMEM footprint: P rounded to the sublane multiple
    for the dtype, t rounded to 128 lanes.
    """
    subl = max(8, 32 // itemsize)          # f32 -> 8, bf16/f16 -> 16, i8 -> 32
    P_pad = _roundup(P, subl)

    def tile_bytes(g, t):
        return g * P_pad * _roundup(t, 128) * itemsize

    # ---- time axis: whole rows (one contiguous DMA) unless a row overflows.
    if T <= 128 or tile_bytes(1, T) <= target_bytes:
        t_block = T
    else:
        k = max(1, target_bytes // tile_bytes(1, 128))
        t_block = 128 * k                   # multiple of 128, < T by construction
    blocks_t = _cdiv(T, t_block)

    # ---- rows per block: as many as fit in the budget.
    g = max(1, min(N, target_bytes // tile_bytes(1, t_block)))

    # ---- megacore balance (v7x): prefer >= 8 total grid steps and an even
    #      block count along the sharded axis, but never shrink tiles below
    #      ~512 KiB padded just to get there (keeps per-step overhead small).
    min_tile = 512 << 10
    blocks_n = _cdiv(N, g)
    want_n = _cdiv(8, blocks_t)
    if blocks_n < want_n:
        g_bal = _cdiv(N, want_n)
        if tile_bytes(g_bal, t_block) >= min_tile:
            g = g_bal
            blocks_n = _cdiv(N, g)
    if 1 < blocks_n <= 8 and blocks_n % 2 == 1:
        g_even = _cdiv(N, blocks_n + 1)
        if tile_bytes(g_even, t_block) >= min_tile:
            g = g_even

    return g, t_block, tile_bytes(g, t_block)


# --------------------------------------------------------------------------
# Public wrapper
# --------------------------------------------------------------------------
def monophonic_layer(x):
    """One-hot along axis 2 at the (first) argmax, same shape/dtype as x."""
    B, C, P, T = x.shape
    N = B * C
    x2 = x.reshape(N, P, T)

    itemsize = jnp.dtype(x.dtype).itemsize
    vmem_limit = _vmem_limit_bytes()
    target = min(8 << 20, vmem_limit // 5)          # ~6-8 MiB per buffer
    g, t_block, tile_padded = _choose_tiling(N, P, T, itemsize, target)

    # Defensive: make sure the double-buffered footprint (2 in + 2 out) fits
    # the scoped limit even for extreme shapes (e.g. enormous P).
    needed = 4 * tile_padded + (2 << 20)
    vmem_limit = max(vmem_limit, needed)

    grid = (_cdiv(N, g), _cdiv(T, t_block))
    block = (g, P, t_block)
    index_map = lambda i, j: (i, 0, j)

    kernel = functools.partial(
        _monophonic_kernel, idx_dtype=_index_dtype(x.dtype, P)
    )

    out2 = pl.pallas_call(
        kernel,
        out_shape=jax.ShapeDtypeStruct((N, P, T), x.dtype),
        grid=grid,
        in_specs=[pl.BlockSpec(block, index_map)],
        out_specs=pl.BlockSpec(block, index_map),
        compiler_params=pltpu.CompilerParams(
            dimension_semantics=("parallel", "parallel"),
            vmem_limit_bytes=int(vmem_limit),
        ),
        cost_estimate=pl.CostEstimate(
            flops=3 * N * P * T,                       # max + cmp + select, roughly
            transcendentals=0,
            bytes_accessed=2 * N * P * T * itemsize,   # 1 read + 1 write / elem
        ),
    )(x2)

    return out2.reshape(B, C, P, T)


# --------------------------------------------------------------------------
# Demo / self-check
# --------------------------------------------------------------------------
if __name__ == "__main__":
    key = jax.random.PRNGKey(0)
    # Small shapes consistent with the module: batch=2, channels=4,
    # pitch=16, time=16.
    x = jax.random.normal(key, (2, 4, 16, 16), dtype=jnp.float32)

    y = monophonic_layer(x)
    jax.block_until_ready(y)

    # Pure-JAX reference: first-occurrence argmax one-hot along axis 2.
    P = x.shape[2]
    iota = jnp.arange(P).reshape(1, 1, P, 1)
    ref = (jnp.argmax(x, axis=2, keepdims=True) == iota).astype(x.dtype)

    assert y.shape == x.shape and y.dtype == x.dtype
    assert jnp.array_equal(y, ref), "mismatch vs reference"
    col_sums = jnp.sum(y, axis=2)
    assert jnp.array_equal(col_sums, jnp.ones_like(col_sums))

    print("KERNEL_OK")
</pallas_src>

<mosaic_0001>
module attributes {stable_mosaic.version = 11 : i64} {
  func.func @_monophonic_kernel(%arg0: i32, %arg1: i32, %arg2: memref<8x16x16xf32, #tpu.memory_space<vmem>>, %arg3: memref<8x16x16xf32, #tpu.memory_space<vmem>>) attributes {dimension_semantics = [#tpu.dimension_semantics<parallel>, #tpu.dimension_semantics<parallel>], iteration_bounds = array<i64: 1, 1>, scalar_prefetch = 0 : i64, scratch_operands = 0 : i64, tpu.core_type = #tpu.core_type<tc>, window_params = [{transform_indices = @transform_0, window_bounds = array<i64: 8, 16, 16>}, {transform_indices = @transform_1, window_bounds = array<i64: 8, 16, 16>}]} {
    %c0 = arith.constant 0 : index
    %c0_0 = arith.constant 0 : index
    %c0_1 = arith.constant 0 : index
    %0 = vector.load %arg2[%c0, %c0_0, %c0_1] : memref<8x16x16xf32, #tpu.memory_space<vmem>>, vector<8x16x16xf32>
    %1 = tpu.iota {dimensions = array<i32: 1>} : vector<1x16x1xi32>
    %2 = arith.sitofp %1 : vector<1x16x1xi32> to vector<1x16x1xf32>
    %cst = arith.constant dense<0xFF800000> : vector<8x16xf32>
    %3 = vector.multi_reduction <maximumf>, %0, %cst [1] : vector<8x16x16xf32> to vector<8x16xf32>
    %4 = vector.shape_cast %3 : vector<8x16xf32> to vector<8x1x16xf32>
    %5 = vector.broadcast %4 : vector<8x1x16xf32> to vector<8x16x16xf32>
    %6 = arith.cmpf oeq, %0, %5 : vector<8x16x16xf32>
    %cst_2 = arith.constant 1.600000e+01 : f32
    %7 = vector.shape_cast %2 : vector<1x16x1xf32> to vector<1x16x1xf32>
    %8 = vector.broadcast %7 : vector<1x16x1xf32> to vector<8x16x16xf32>
    %9 = vector.broadcast %cst_2 : f32 to vector<8x16x16xf32>
    %10 = arith.select %6, %8, %9 : vector<8x16x16xi1>, vector<8x16x16xf32>
    %cst_3 = arith.constant dense<0x7F800000> : vector<8x16xf32>
    %11 = vector.multi_reduction <minimumf>, %10, %cst_3 [1] : vector<8x16x16xf32> to vector<8x16xf32>
    %12 = vector.shape_cast %11 : vector<8x16xf32> to vector<8x1x16xf32>
    %13 = vector.broadcast %2 : vector<1x16x1xf32> to vector<8x16x16xf32>
    %14 = vector.broadcast %12 : vector<8x1x16xf32> to vector<8x16x16xf32>
    %15 = arith.cmpf oeq, %13, %14 : vector<8x16x16xf32>
    %16 = arith.extui %15 : vector<8x16x16xi1> to vector<8x16x16xi32>
    %17 = arith.sitofp %16 : vector<8x16x16xi32> to vector<8x16x16xf32>
    %c0_4 = arith.constant 0 : index
    %c0_5 = arith.constant 0 : index
    %c0_6 = arith.constant 0 : index
    %18 = vector.load %arg3[%c0_4, %c0_5, %c0_6] : memref<8x16x16xf32, #tpu.memory_space<vmem>>, vector<8x16x16xf32>
    tpu.vector_store %arg3[%c0_4, %c0_5, %c0_6], %17 {strides = array<i32>} : memref<8x16x16xf32, #tpu.memory_space<vmem>>, vector<8x16x16xf32>,
    return
  }
  func.func @transform_0(%arg0: i32, %arg1: i32) -> (i32, i32, i32) {
    %c0_i32 = arith.constant 0 : i32
    %c0_i32_0 = arith.constant 0 : i32
    return %arg0, %c0_i32, %arg1 : i32, i32, i32
  }
  func.func @transform_1(%arg0: i32, %arg1: i32) -> (i32, i32, i32) {
    %c0_i32 = arith.constant 0 : i32
    %c0_i32_0 = arith.constant 0 : i32
    return %arg0, %c0_i32, %arg1 : i32, i32, i32
  }
}

</mosaic_0001>

<bundles_post_ra>
// kernel: tpu_custom_call.1
= control target key start
LH: loop header
LB: loop body
LE: loop exit
PB: predicated region body
PF: predicated region fallthrough
CT: control target
= control target key end

     0   :  { %6 = vsyncpa [#allocation3], 0  ;;  %s586_s0 = inlined_call_operand.hbm [shape: f32[8,16,16], index: 0, kind: input, shape index: {}]   ;;  %s587_s1 = inlined_call_operand.hbm [shape: f32[8,16,16], index: 1, kind: output, shape index: {}]  }
   0x1   :  { %7 = vsyncpa [#allocation4], 0  ;;  %s371_s6 = smov [#allocation2]   ;;  %s323_s10 = scalar_lea.hbm %s586_s0, 2048 }
   0x2   :  { %s13_s7 = sshll.u32 %s371_s6, 4  ;;  %p324_p0 = scmp.ne.s32.totalorder %s586_s0, %s323_s10  ;;  %s14_s7 = int_to_ptr.vmem [resolvable:$true] %s13_s7 }
   0x3   :  { %p327_p1 = scmp.lt.u32.totalorder %s323_s10, %s586_s0 }
   0x5   :  { %p329_p2 = pnand %p327_p1, %p324_p0 }
   0x7   :  { %332 = shalt.err (!%p329_p2)
}
   0x8   :  { %s333_s15 = scalar_lea.vmem %s14_s7, 2048  ;;  %p338_p4 = scmp.lt.s32.totalorder %s14_s7, %s14_s7 }
   0x9   :  { %p334_p3 = scmp.ne.s32.totalorder %s14_s7, %s333_s15  ;;  %p339_p5 = scmp.lt.s32.totalorder %s333_s15, %s333_s15 }
   0xb   :  { %p340_p6 = por %p339_p5, %p338_p4 }
   0xd   :  { %p341_p7 = pnand %p340_p6, %p334_p3 }
   0xf   :  { %344 = shalt.err (!%p341_p7)
}
  0x10   :  { %s372_s16 = smov 128   ;;  %s373_s17 = smov 8  }
  0x11   :  { %19 = dma.hbm_to_vmem [thread:$0]  %s586_s0, 2048, %s14_s7, [#allocation3], %s372_s16, %s372_s16, %s373_s17  }
  0x12   :  { %367 = dma.done.wait [#allocation3], 2048  }
  0x13   :  { %368 = vsyncadd [#allocation3], 4294965248  ;;  %v39_v0 = vlaneseq  ;;  %vm44_vm0 = vcmask 130048   ;;  %v401_v3 = vld [vmem:[#allocation2] sm:$0xff]  ;;  %v403_v4 = vld [vmem:[#allocation2 + $0x8] sm:$0xff]  ;;  %s375_s0 = smov [#allocation5]  }
  0x14   :  { %v407_v6 = vld [vmem:[#allocation2 + $0x10] sm:$0xff]  ;;  %v45_v8 = vsel %vm44_vm0, %v401_v3, -inf  ;;  %v46_v9 = vsel %vm44_vm0, %v403_v4, -inf  ;;  %v415_v10 = vld [vmem:[#allocation2 + $0x18] sm:$0xff]  ;;  %v419_v12 = vld [vmem:[#allocation2 + $0x20] sm:$0xff]  ;;  %s290_s20 = sshll.u32 %s375_s0, 4  ;;  %s291_s20 = int_to_ptr.vmem [resolvable:$true] %s290_s20 }
  0x15   :  { %v40_v1 = vshrl.u32 %v39_v0, 7  ;;  %v54_v11 = vsel %vm44_vm0, %v407_v6, -inf  ;;  %v421_v13 = vld [vmem:[#allocation2 + $0x28] sm:$0xff]  ;;  %v47_v14 = vmax.f32 %v45_v8, %v46_v9  ;;  %v55_v15 = vsel %vm44_vm0, %v415_v10, -inf  ;;  %v429_v18 = vld [vmem:[#allocation2 + $0x30] sm:$0xff]  ;;  %v431_v19 = vld [vmem:[#allocation2 + $0x38] sm:$0xff]  ;;  %p350_p9 = scmp.lt.s32.totalorder %s291_s20, %s291_s20 }
  0x16   :  { %v63_v16 = vsel %vm44_vm0, %v419_v12, -inf  ;;  %v64_v17 = vsel %vm44_vm0, %v421_v13, -inf  ;;  %v433_v20 = vld [vmem:[#allocation2 + $0x40] sm:$0xff]  ;;  %v56_v21 = vmax.f32 %v54_v11, %v55_v15  ;;  %v72_v23 = vsel %vm44_vm0, %v429_v18, -inf  ;;  %v439_v25 = vld [vmem:[#allocation2 + $0x48] sm:$0xff]  ;;  %v441_v26 = vld [vmem:[#allocation2 + $0x50] sm:$0xff] }
  0x17   :  { %v41_v2 = vadd.s32 8, %v40_v1  ;;  %v405_v5 = vcvt.s32.f32 %v40_v1  ;;  %v65_v22 = vmax.f32 %v63_v16, %v64_v17  ;;  %v73_v24 = vsel %vm44_vm0, %v431_v19, -inf  ;;  %v443_v27 = vld [vmem:[#allocation2 + $0x58] sm:$0xff]  ;;  %v449_v32 = vld [vmem:[#allocation2 + $0x60] sm:$0xff]  ;;  %v453_v37 = vld [vmem:[#allocation2 + $0x68] sm:$0xff]  ;;  %s345_s21 = scalar_lea.vmem %s291_s20, 2048 }
  0x18   :  { %v48_v28 = vrot.slane %v47_v14, 4  ;;  %v74_v29 = vmax.f32 %v72_v23, %v73_v24  ;;  %v81_v30 = vsel %vm44_vm0, %v433_v20, -inf  ;;  %v82_v31 = vsel %vm44_vm0, %v439_v25, -inf  ;;  %v455_v38 = vld [vmem:[#allocation2 + $0x70] sm:$0xff]  ;;  %v461_v47 = vld [vmem:[#allocation2 + $0x78] sm:$0xff]  ;;  %p346_p8 = scmp.ne.s32.totalorder %s291_s20, %s345_s21  ;;  %p351_p10 = scmp.lt.s32.totalorder %s345_s21, %s345_s21 }
  0x19   :  { %v409_v7 = vcvt.s32.f32 %v41_v2  ;;  %v57_v33 = vrot.slane %v56_v21, 4  ;;  %v66_v34 = vrot.slane %v65_v22, 4  ;;  %v83_v35 = vmax.f32 %v81_v30, %v82_v31 }
  0x1a   :  { %v90_v36 = vsel %vm44_vm0, %v441_v26, -inf  ;;  %v49_v39 = vmax.f32 %v47_v14, %v48_v28  ;;  %v75_v40 = vrot.slane %v74_v29, 4  ;;  %v91_v41 = vsel %vm44_vm0, %v443_v27, -inf  ;;  %p352_p11 = por %p351_p10, %p350_p9 }
  0x1b   :  { %v99_v42 = vsel %vm44_vm0, %v449_v32, -inf  ;;  %v58_v43 = vmax.f32 %v56_v21, %v57_v33  ;;  %v67_v44 = vmax.f32 %v65_v22, %v66_v34  ;;  %v84_v45 = vrot.slane %v83_v35, 4 }
  0x1c   :  { %v92_v46 = vmax.f32 %v90_v36, %v91_v41  ;;  %v50_v48 = vrot.slane %v49_v39, 2  ;;  %v76_v49 = vmax.f32 %v74_v29, %v75_v40  ;;  %v100_v50 = vsel %vm44_vm0, %v453_v37, -inf  ;;  %p353_p12 = pnand %p352_p11, %p346_p8 }
  0x1d   :  { %v108_v51 = vsel %vm44_vm0, %v455_v38, -inf  ;;  %v59_v52 = vrot.slane %v58_v43, 2  ;;  %v68_v53 = vrot.slane %v67_v44, 2  ;;  %v85_v54 = vmax.f32 %v83_v35, %v84_v45 }
  0x1e   :  { %v93_v55 = vrot.slane %v92_v46, 4  ;;  %v51_v56 = vmax.f32 %v49_v39, %v50_v48  ;;  %v77_v57 = vrot.slane %v76_v49, 2  ;;  %v101_v58 = vmax.f32 %v99_v42, %v100_v50 }
  0x1f   :  { %v109_v59 = vsel %vm44_vm0, %v461_v47, -inf  ;;  %v60_v60 = vmax.f32 %v58_v43, %v59_v52  ;;  %v69_v61 = vmax.f32 %v67_v44, %v68_v53  ;;  %v86_v62 = vrot.slane %v85_v54, 2 }
  0x20   :  { %v94_v63 = vmax.f32 %v92_v46, %v93_v55  ;;  %v52_v0 = vrot.slane %v51_v56, 1  ;;  %v78_v1 = vmax.f32 %v76_v49, %v77_v57  ;;  %v102_v2 = vrot.slane %v101_v58, 4 }
  0x21   :  { %v110_v8 = vmax.f32 %v108_v51, %v109_v59  ;;  %v61_v9 = vrot.slane %v60_v60, 1  ;;  %v70_v11 = vrot.slane %v69_v61, 1  ;;  %v87_v14 = vmax.f32 %v85_v54, %v86_v62 }
  0x22   :  { %v95_v15 = vrot.slane %v94_v63, 2  ;;  %v53_v16 = vmax.f32 %v51_v56, %v52_v0  ;;  %v79_v17 = vrot.slane %v78_v1, 1  ;;  %v103_v21 = vmax.f32 %v101_v58, %v102_v2 }
  0x23   :  { %v111_v22 = vrot.slane %v110_v8, 4  ;;  %v62_v23 = vmax.f32 %v60_v60, %v61_v9  ;;  %v71_v24 = vmax.f32 %v69_v61, %v70_v11  ;;  %v88_v28 = vrot.slane %v87_v14, 1 }
  0x24   :  { %v96_v29 = vmax.f32 %v94_v63, %v95_v15  ;;  %vm117_vm1 = vcmp.eq.f32.partialorder %v401_v3, %v53_v16  ;;  %vm118_vm2 = vcmp.eq.f32.partialorder %v403_v4, %v53_v16  ;;  %v80_v30 = vmax.f32 %v78_v1, %v79_v17 }
  0x25   :  { %v104_v31 = vrot.slane %v103_v21, 2  ;;  %v133_v33 = vsel %vm117_vm1, %v405_v5, 16.0  ;;  %v134_v34 = vsel %vm118_vm2, %v409_v7, 16.0  ;;  %vm119_vm3 = vcmp.eq.f32.partialorder %v407_v6, %v62_v23 }
  0x26   :  { %vm120_vm4 = vcmp.eq.f32.partialorder %v415_v10, %v62_v23  ;;  %v149_v35 = vsel %vm44_vm0, %v133_v33, inf  ;;  %v150_v36 = vsel %vm44_vm0, %v134_v34, inf  ;;  %v135_v39 = vsel %vm119_vm3, %v405_v5, 16.0 }
  0x27   :  { %v136_v3 = vsel %vm120_vm4, %v409_v7, 16.0  ;;  %v151_v40 = vmin.f32 %v149_v35, %v150_v36  ;;  %v158_v4 = vsel %vm44_vm0, %v135_v39, inf  ;;  %vm121_vm5 = vcmp.eq.f32.partialorder %v419_v12, %v71_v24 }
  0x28   :  { %v159_v41 = vsel %vm44_vm0, %v136_v3, inf  ;;  %vm122_vm6 = vcmp.eq.f32.partialorder %v421_v13, %v71_v24  ;;  %v137_v6 = vsel %vm121_vm5, %v405_v5, 16.0  ;;  %vm123_vm7 = vcmp.eq.f32.partialorder %v429_v18, %v80_v30 }
  0x29   :  { %v160_v42 = vmin.f32 %v158_v4, %v159_v41  ;;  %v152_v10 = vrot.slane %v151_v40, 4  ;;  %v138_v43 = vsel %vm122_vm6, %v409_v7, 16.0  ;;  %v167_v44 = vsel %vm44_vm0, %v137_v6, inf }
  0x2a   :  { %vm124_vm8 = vcmp.eq.f32.partialorder %v431_v19, %v80_v30  ;;  %v168_v46 = vsel %vm44_vm0, %v138_v43, inf  ;;  %v139_v48 = vsel %vm123_vm7, %v405_v5, 16.0  ;;  %v89_v53 = vmax.f32 %v87_v14, %v88_v28 }
  0x2b   :  { %v161_v45 = vrot.slane %v160_v42, 4  ;;  %v140_v12 = vsel %vm124_vm8, %v409_v7, 16.0  ;;  %v153_v49 = vmin.f32 %v151_v40, %v152_v10  ;;  %v169_v13 = vmin.f32 %v167_v44, %v168_v46 }
  0x2c   :  { %v176_v50 = vsel %vm44_vm0, %v139_v48, inf  ;;  %v177_v18 = vsel %vm44_vm0, %v140_v12, inf  ;;  %v97_v54 = vrot.slane %v96_v29, 1  ;;  %v105_v19 = vmax.f32 %v103_v21, %v104_v31 }
  0x2d   :  { %v162_v51 = vmin.f32 %v160_v42, %v161_v45  ;;  %v178_v52 = vmin.f32 %v176_v50, %v177_v18  ;;  %v154_v55 = vrot.slane %v153_v49, 2  ;;  %v170_v56 = vrot.slane %v169_v13, 4 }
  0x2e   :  { %v493_v57 = vmax.f32 %v110_v8, %v111_v22  ;;  %vm125_vm9 = vcmp.eq.f32.partialorder %v433_v20, %v89_v53  ;;  %vm126_vm10 = vcmp.eq.f32.partialorder %v439_v25, %v89_v53  ;;  %v98_v15 = vmax.f32 %v96_v29, %v97_v54 }
  0x2f   :  { %v163_v58 = vrot.slane %v162_v51, 2  ;;  %v179_v59 = vrot.slane %v178_v52, 4  ;;  %v155_v60 = vmin.f32 %v153_v49, %v154_v55  ;;  %v171_v61 = vmin.f32 %v169_v13, %v170_v56 }
  0x30   :  { %v141_v62 = vsel %vm125_vm9, %v405_v5, 16.0  ;;  %v142_v63 = vsel %vm126_vm10, %v409_v7, 16.0  ;;  %v106_v17 = vrot.slane %v105_v19, 1  ;;  %v113_v25 = vrot.slane %v493_v57, 2 }
  0x31   :  { %v164_v0 = vmin.f32 %v162_v51, %v163_v58  ;;  %v180_v1 = vmin.f32 %v178_v52, %v179_v59  ;;  %v185_v2 = vsel %vm44_vm0, %v141_v62, inf  ;;  %v186_v9 = vsel %vm44_vm0, %v142_v63, inf }
  0x32   :  { %v156_v8 = vrot.slane %v155_v60, 1  ;;  %v172_v11 = vrot.slane %v171_v61, 2  ;;  %v187_v14 = vmin.f32 %v185_v2, %v186_v9  ;;  %vm127_vm11 = vcmp.eq.f32.partialorder %v441_v26, %v98_v15 }
  0x33   :  { %v165_v16 = vrot.slane %v164_v0, 1  ;;  %v181_v20 = vrot.slane %v180_v1, 2  ;;  %vm128_vm12 = vcmp.eq.f32.partialorder %v443_v27, %v98_v15  ;;  %v143_v30 = vsel %vm127_vm11, %v405_v5, 16.0 }
  0x34   :  { %v157_v21 = vmin.f32 %v155_v60, %v156_v8  ;;  %v173_v22 = vmin.f32 %v171_v61, %v172_v11  ;;  %v188_v23 = vrot.slane %v187_v14, 4  ;;  %v374_v33 = vmov 0.0  }
  0x35   :  { %v166_v24 = vmin.f32 %v164_v0, %v165_v16  ;;  %v182_v28 = vmin.f32 %v180_v1, %v181_v20  ;;  %v144_v4 = vsel %vm128_vm12, %v409_v7, 16.0  ;;  %v194_v41 = vsel %vm44_vm0, %v143_v30, inf }
  0x36   :  { %vm221_vm13 = vcmp.eq.f32.partialorder %v405_v5, %v157_v21  ;;  %vm222_vm14 = vcmp.eq.f32.partialorder %v409_v7, %v157_v21  ;;  %v174_v29 = vrot.slane %v173_v22, 1  ;;  %v189_v31 = vmin.f32 %v187_v14, %v188_v23 }
  0x37   :  { %v302_v34 = vsel %vm221_vm13, 1.0, %v374_v33  ;;  %v303_v35 = vsel %vm222_vm14, 1.0, %v374_v33  ;;  %vm223_vm15 = vcmp.eq.f32.partialorder %v405_v5, %v166_v24  ;;  %vm224_vm1 = vcmp.eq.f32.partialorder %v409_v7, %v166_v24 }
  0x38   :  { %269 = vst.msk [vmem:[#allocation5] sm:$0xff] %vm44_vm0, %v302_v34  ;;  %270 = vst.msk [vmem:[#allocation5 + $0x8] sm:$0xff] %vm44_vm0, %v303_v35  ;;  %v304_v26 = vsel %vm223_vm15, 1.0, %v374_v33  ;;  %v305_v36 = vsel %vm224_vm1, 1.0, %v374_v33  ;;  %v175_v39 = vmin.f32 %v173_v22, %v174_v29  ;;  %v183_v3 = vrot.slane %v182_v28, 1 }
  0x39   :  { %271 = vst.msk [vmem:[#allocation5 + $0x10] sm:$0xff] %vm44_vm0, %v304_v26  ;;  %272 = vst.msk [vmem:[#allocation5 + $0x18] sm:$0xff] %vm44_vm0, %v305_v36  ;;  %v190_v40 = vrot.slane %v189_v31, 2  ;;  %v107_v42 = vmax.f32 %v105_v19, %v106_v17  ;;  %v195_v10 = vsel %vm44_vm0, %v144_v4, inf  ;;  %v114_v18 = vmax.f32 %v493_v57, %v113_v25 }
  0x3a   :  { %vm225_vm2 = vcmp.eq.f32.partialorder %v405_v5, %v175_v39  ;;  %vm226_vm3 = vcmp.eq.f32.partialorder %v409_v7, %v175_v39  ;;  %v184_v6 = vmin.f32 %v182_v28, %v183_v3  ;;  %v196_v46 = vmin.f32 %v194_v41, %v195_v10 }
  0x3b   :  { %v306_v43 = vsel %vm225_vm2, 1.0, %v374_v33  ;;  %v307_v44 = vsel %vm226_vm3, 1.0, %v374_v33  ;;  %v191_v45 = vmin.f32 %v189_v31, %v190_v40  ;;  %vm129_vm6 = vcmp.eq.f32.partialorder %v449_v32, %v107_v42 }
  0x3c   :  { %273 = vst.msk [vmem:[#allocation5 + $0x20] sm:$0xff] %vm44_vm0, %v306_v43  ;;  %274 = vst.msk [vmem:[#allocation5 + $0x28] sm:$0xff] %vm44_vm0, %v307_v44  ;;  %vm227_vm4 = vcmp.eq.f32.partialorder %v405_v5, %v184_v6  ;;  %vm228_vm5 = vcmp.eq.f32.partialorder %v409_v7, %v184_v6  ;;  %vm130_vm7 = vcmp.eq.f32.partialorder %v453_v37, %v107_v42  ;;  %v197_v49 = vrot.slane %v196_v46, 4 }
  0x3d   :  { %v308_v27 = vsel %vm227_vm4, 1.0, %v374_v33  ;;  %v309_v48 = vsel %vm228_vm5, 1.0, %v374_v33  ;;  %v192_v12 = vrot.slane %v191_v45, 1  ;;  %v145_v13 = vsel %vm129_vm6, %v405_v5, 16.0 }
  0x3e   :  { %275 = vst.msk [vmem:[#allocation5 + $0x30] sm:$0xff] %vm44_vm0, %v308_v27  ;;  %276 = vst.msk [vmem:[#allocation5 + $0x38] sm:$0xff] %vm44_vm0, %v309_v48  ;;  %v146_v50 = vsel %vm130_vm7, %v409_v7, 16.0  ;;  %v198_v32 = vmin.f32 %v196_v46, %v197_v49  ;;  %v203_v37 = vsel %vm44_vm0, %v145_v13, inf  ;;  %v115_v54 = vrot.slane %v114_v18, 1 }
  0x3f   :  { %v193_v51 = vmin.f32 %v191_v45, %v192_v12  ;;  %v204_v52 = vsel %vm44_vm0, %v146_v50, inf }
  0x40   :  { %v205_v53 = vmin.f32 %v203_v37, %v204_v52  ;;  %v199_v55 = vrot.slane %v198_v32, 2  ;;  %v116_v59 = vmax.f32 %v114_v18, %v115_v54 }
  0x41   :  { %vm229_vm8 = vcmp.eq.f32.partialorder %v405_v5, %v193_v51  ;;  %vm230_vm9 = vcmp.eq.f32.partialorder %v409_v7, %v193_v51 }
  0x42   :  { %v310_v56 = vsel %vm229_vm8, 1.0, %v374_v33  ;;  %v311_v19 = vsel %vm230_vm9, 1.0, %v374_v33  ;;  %v206_v58 = vrot.slane %v205_v53, 4  ;;  %v200_v57 = vmin.f32 %v198_v32, %v199_v55 }
  0x43   :  { %277 = vst.msk [vmem:[#allocation5 + $0x40] sm:$0xff] %vm44_vm0, %v310_v56  ;;  %278 = vst.msk [vmem:[#allocation5 + $0x48] sm:$0xff] %vm44_vm0, %v311_v19  ;;  %vm131_vm10 = vcmp.eq.f32.partialorder %v455_v38, %v116_v59  ;;  %vm132_vm11 = vcmp.eq.f32.partialorder %v461_v47, %v116_v59 }
  0x44   :  { %v207_v60 = vmin.f32 %v205_v53, %v206_v58  ;;  %v201_v61 = vrot.slane %v200_v57, 1  ;;  %v147_v62 = vsel %vm131_vm10, %v405_v5, 16.0  ;;  %v148_v63 = vsel %vm132_vm11, %v409_v7, 16.0 }
  0x45   :  { %v212_v1 = vsel %vm44_vm0, %v147_v62, inf  ;;  %v213_v2 = vsel %vm44_vm0, %v148_v63, inf }
  0x46   :  { %v208_v0 = vrot.slane %v207_v60, 2  ;;  %v202_v9 = vmin.f32 %v200_v57, %v201_v61  ;;  %v214_v8 = vmin.f32 %v212_v1, %v213_v2 }
  0x48   :  { %v209_v11 = vmin.f32 %v207_v60, %v208_v0  ;;  %vm231_vm12 = vcmp.eq.f32.partialorder %v405_v5, %v202_v9  ;;  %vm232_vm13 = vcmp.eq.f32.partialorder %v409_v7, %v202_v9  ;;  %v215_v38 = vrot.slane %v214_v8, 4 }
  0x49   :  { %v312_v47 = vsel %vm231_vm12, 1.0, %v374_v33  ;;  %v313_v14 = vsel %vm232_vm13, 1.0, %v374_v33 }
  0x4a   :  { %v210_v15 = vrot.slane %v209_v11, 1  ;;  %279 = vst.msk [vmem:[#allocation5 + $0x50] sm:$0xff] %vm44_vm0, %v312_v47  ;;  %280 = vst.msk [vmem:[#allocation5 + $0x58] sm:$0xff] %vm44_vm0, %v313_v14  ;;  %v216_v16 = vmin.f32 %v214_v8, %v215_v38 }
  0x4c   :  { %v211_v20 = vmin.f32 %v209_v11, %v210_v15  ;;  %v217_v17 = vrot.slane %v216_v16, 2 }
  0x4e   :  { %vm233_vm14 = vcmp.eq.f32.partialorder %v405_v5, %v211_v20  ;;  %vm234_vm15 = vcmp.eq.f32.partialorder %v409_v7, %v211_v20  ;;  %v218_v22 = vmin.f32 %v216_v16, %v217_v17 }
  0x4f   :  { %v314_v25 = vsel %vm233_vm14, 1.0, %v374_v33  ;;  %v315_v21 = vsel %vm234_vm15, 1.0, %v374_v33 }
  0x50   :  { %281 = vst.msk [vmem:[#allocation5 + $0x60] sm:$0xff] %vm44_vm0, %v314_v25  ;;  %282 = vst.msk [vmem:[#allocation5 + $0x68] sm:$0xff] %vm44_vm0, %v315_v21  ;;  %v219_v23 = vrot.slane %v218_v22, 1 }
  0x52   :  { %v220_v24 = vmin.f32 %v218_v22, %v219_v23 }
  0x54   :  { %vm235_vm1 = vcmp.eq.f32.partialorder %v405_v5, %v220_v24  ;;  %vm236_vm2 = vcmp.eq.f32.partialorder %v409_v7, %v220_v24 }
  0x55   :  { %v316_v28 = vsel %vm235_vm1, 1.0, %v374_v33  ;;  %v317_v30 = vsel %vm236_vm2, 1.0, %v374_v33 }
  0x56   :  { %283 = vst.msk [vmem:[#allocation5 + $0x70] sm:$0xff] %vm44_vm0, %v316_v28  ;;  %284 = vst.msk [vmem:[#allocation5 + $0x78] sm:$0xff] %vm44_vm0, %v317_v30 }
  0x57   :  { %356 = shalt.err (!%p353_p12)
}
  0x58   :  { %s357_s24 = scalar_lea.hbm %s587_s1, 2048 }
  0x59   :  { %p358_p13 = scmp.ne.s32.totalorder %s587_s1, %s357_s24  ;;  %p361_p0 = scmp.lt.u32.totalorder %s357_s24, %s587_s1 }
  0x5b   :  { %p363_p1 = pnand %p361_p0, %p358_p13 }
  0x5d   :  { %366 = shalt.err (!%p363_p1)
}
  0x5e   :  { %296 = dma.vmem_to_hbm [thread:$0]  %s291_s20, 2048, %s587_s1, [#allocation4], %s372_s16, %s372_s16, %s373_s17  }
  0x5f   :  { %369 = dma.done.wait [#allocation4], 2048  }
  0x60   :  { %370 = vsyncadd [#allocation4], 4294965248 }
  0x61   :  { %300 = vsyncpa [#allocation3], 1 }
  0x62   :  { %301 = vsyncpa [#allocation4], 1 }

</bundles_post_ra>
